<compile_context>
chip_gen: v6e
topology: v6e:2x2x1
jax: 0.10.0
libtpu: 0.0.40
codegen_flags: <defaults>
</compile_context>

<pallas_src>
import functools

import jax
import jax.numpy as jnp
from jax.experimental import pallas as pl
from jax.experimental.pallas import tpu as pltpu


def _round_up(x, m):
    return ((x + m - 1) // m) * m


def _vmem_capacity_bytes():
    """Physical VMEM of the local chip; conservative (v7x) fallback."""
    try:
        info = pltpu.get_tpu_info()
        cap = getattr(info, "vmem_capacity_bytes", None)
        if cap:
            return int(cap)
    except Exception:
        pass
    return 64 * 1024 * 1024


def _choose_tb(batch, feat, ep, x_itemsize, out_itemsize, vmem_cap):
    """Pick the batch tile from the VMEM budget (double-buffered x/out blocks)."""
    per_row = 2 * 5 * feat * x_itemsize + 2 * ep * out_itemsize
    budget = int(vmem_cap * 0.45)          # ~28 MiB on v7x, ~57 MiB on v5e/v6e
    tb = max(16, min(4096, (budget // per_row) // 16 * 16))
    b_pad16 = _round_up(batch, 16)
    if b_pad16 <= tb:
        tb = b_pad16
        if tb >= 1024:                     # keep >=2 grid steps for v7x megacore
            tb = _round_up(tb // 2, 16)
    return tb


def _invpref_kernel(x_ref, w_ref, b_ref, out_ref, *, env_num):
    # x_ref  : (5, TB, F) bf16 stacked gathered embeddings
    # w_ref  : (2, F, EP) f32 augmented classifier weights (see wrapper)
    # b_ref  : (1, EP)    f32 bias in cols [0:E), zeros elsewhere
    # out_ref: (TB, EP)   cols [0:E) log-softmax, col E inv_score, col E+1 env_score
    f32 = jnp.float32
    # Up-cast immediately after load (v5e VPU has no bf16 math); the casts fuse
    # into the elementwise multiplies and hide under the input DMA.
    inv_pref = x_ref[0].astype(f32) * x_ref[1].astype(f32)                       # (TB, F)
    env_pref = x_ref[2].astype(f32) * x_ref[3].astype(f32) * x_ref[4].astype(f32)

    combined = (
        jnp.dot(inv_pref, w_ref[0], preferred_element_type=f32)
        + jnp.dot(env_pref, w_ref[1], preferred_element_type=f32)
        + b_ref[...]
    )                                                                            # (TB, EP)
    # combined cols: [0:E) = logits, E = sum(inv_pref), E+1 = sum(inv)+sum(env)

    lane = jax.lax.broadcasted_iota(jnp.int32, combined.shape, 1)
    is_logit = lane < env_num

    # masked, max-stabilized log-softmax over the first E lanes only
    masked = jnp.where(is_logit, combined, jnp.float32(-1e30))
    m = jnp.max(masked, axis=1, keepdims=True)
    z = masked - m
    lse = jnp.log(jnp.sum(jnp.where(is_logit, jnp.exp(z), 0.0),
                          axis=1, keepdims=True))
    log_softmax = z - lse

    # lane-dense store: log-softmax in logit lanes, raw scores / zeros elsewhere
    out_ref[...] = jnp.where(is_logit, log_softmax, combined).astype(out_ref.dtype)


def invpref_forward(params, users_id, items_id, envs_id, alpha=1.0,
                    stage_dtype=jnp.bfloat16, out_dtype=jnp.bfloat16):
    """Pallas-backed equivalent of InvPrefExplicit.forward."""
    del alpha  # ReverseLayerF is identity in the forward pass

    w = params["cls_weight"]          # (E, F)  nn.Linear weight
    b = params["cls_bias"]            # (E,)
    E, F = w.shape
    EP = _round_up(E + 2, 128)        # lane-dense output width

    x_itemsize = jnp.dtype(stage_dtype).itemsize
    out_itemsize = jnp.dtype(out_dtype).itemsize
    vmem_cap = _vmem_capacity_bytes()

    B = users_id.shape[0]
    TB = _choose_tb(B, F, EP, x_itemsize, out_itemsize, vmem_cap)
    B_pad = _round_up(B, TB)
    pad = B_pad - B
    uid = jnp.pad(users_id, (0, pad))     # pad ids with 0 (always in range)
    iid = jnp.pad(items_id, (0, pad))
    eid = jnp.pad(envs_id, (0, pad))

    # --- glue: embedding gathers, stacked into one dense bf16 staging array ---
    x = jnp.stack(
        [
            params["embed_user_invariant"][uid],
            params["embed_item_invariant"][iid],
            params["embed_user_env_aware"][uid],
            params["embed_item_env_aware"][iid],
            params["embed_env"][eid],
        ],
        axis=0,
    ).astype(stage_dtype)                                   # (5, B_pad, F)

    # --- augmented classifier slab (f32, resident in VMEM) ---
    w_top = jnp.zeros((F, EP), jnp.float32).at[:, :E].set(w.T.astype(jnp.float32))
    w_top = w_top.at[:, E].set(1.0).at[:, E + 1].set(1.0)   # inv sum + inv part of env score
    w_bot = jnp.zeros((F, EP), jnp.float32).at[:, E + 1].set(1.0)   # env-aware sum
    w_stack = jnp.stack([w_top, w_bot], axis=0)              # (2, F, EP)
    b_aug = jnp.zeros((1, EP), jnp.float32).at[0, :E].set(b.astype(jnp.float32))

    # --- explicit VMEM accounting: double-buffered x/out blocks + weights ---
    block_bytes = (2 * 5 * TB * F * x_itemsize          # x block, double-buffered
                   + 2 * TB * EP * out_itemsize          # out block, double-buffered
                   + 2 * 2 * F * EP * 4                  # weight slab (2x for safety)
                   + 2 * EP * 4)                         # bias
    vmem_limit = int(min(int(vmem_cap * 0.75),
                         max(8 * 1024 * 1024, int(block_bytes * 1.5))))

    cost = pl.CostEstimate(
        flops=2 * 2 * B_pad * F * EP + 8 * B_pad * F,
        transcendentals=B_pad * (EP + 1),
        bytes_accessed=(5 * B_pad * F * x_itemsize
                        + B_pad * EP * out_itemsize
                        + 2 * F * EP * 4 + EP * 4),
    )

    out = pl.pallas_call(
        functools.partial(_invpref_kernel, env_num=E),
        out_shape=jax.ShapeDtypeStruct((B_pad, EP), out_dtype),
        grid=(B_pad // TB,),
        in_specs=[
            pl.BlockSpec((5, TB, F), lambda i: (0, i, 0)),   # batch-tiled embeddings
            pl.BlockSpec((2, F, EP), lambda i: (0, 0, 0)),   # resident weights
            pl.BlockSpec((1, EP), lambda i: (0, 0)),         # resident bias
        ],
        out_specs=pl.BlockSpec((TB, EP), lambda i: (i, 0)),
        compiler_params=pltpu.CompilerParams(
            dimension_semantics=("parallel",),
            vmem_limit_bytes=vmem_limit,
        ),
        cost_estimate=cost,
    )(x, w_stack, b_aug)

    # Single result slice, then cheap in-register splits (avoids three separate
    # strided HBM re-reads of the padded (B_pad, EP) block).
    res = out[:B, :E + 2].astype(jnp.float32)
    env_out = res[:, :E]
    inv_score = res[:, E]
    env_score = res[:, E + 1]
    return inv_score.reshape(-1), env_score.reshape(-1), env_out.reshape(-1, E)


def init_params(key, user_num, item_num, env_num, factor_num):
    ks = jax.random.split(key, 7)
    std = 0.01
    params = {
        "embed_user_invariant": std * jax.random.normal(ks[0], (user_num, factor_num), jnp.float32),
        "embed_item_invariant": std * jax.random.normal(ks[1], (item_num, factor_num), jnp.float32),
        "embed_user_env_aware": std * jax.random.normal(ks[2], (user_num, factor_num), jnp.float32),
        "embed_item_env_aware": std * jax.random.normal(ks[3], (item_num, factor_num), jnp.float32),
        "embed_env": std * jax.random.normal(ks[4], (env_num, factor_num), jnp.float32),
    }
    # LinearLogSoftMaxEnvClassifier: xavier_uniform_ weight, default-uniform bias
    limit_w = (6.0 / (factor_num + env_num)) ** 0.5
    params["cls_weight"] = jax.random.uniform(
        ks[5], (env_num, factor_num), jnp.float32, -limit_w, limit_w)
    limit_b = 1.0 / (factor_num ** 0.5)
    params["cls_bias"] = jax.random.uniform(
        ks[6], (env_num,), jnp.float32, -limit_b, limit_b)
    return params


def _reference_forward(params, users_id, items_id, envs_id):
    # Pure-JAX reference matching InvPrefExplicit.forward exactly (f32).
    u_inv = params["embed_user_invariant"][users_id]
    i_inv = params["embed_item_invariant"][items_id]
    u_env = params["embed_user_env_aware"][users_id]
    i_env = params["embed_item_env_aware"][items_id]
    e_emb = params["embed_env"][envs_id]
    inv_pref = u_inv * i_inv
    env_pref = u_env * i_env * e_emb
    inv_score = jnp.sum(inv_pref, axis=1)
    env_mid = jnp.sum(env_pref, axis=1)
    env_score = inv_score + env_mid
    logits = inv_pref @ params["cls_weight"].T + params["cls_bias"]
    env_out = jax.nn.log_softmax(logits, axis=1)
    return inv_score, env_score, env_out


if __name__ == "__main__":
    user_num, item_num, env_num, factor_num = 32, 48, 4, 32
    batch = 8

    key = jax.random.PRNGKey(0)
    k_param, k_u, k_i, k_e = jax.random.split(key, 4)
    params = init_params(k_param, user_num, item_num, env_num, factor_num)

    users_id = jax.random.randint(k_u, (batch,), 0, user_num)
    items_id = jax.random.randint(k_i, (batch,), 0, item_num)
    envs_id = jax.random.randint(k_e, (batch,), 0, env_num)

    inv_score, env_aware_score, env_outputs = invpref_forward(
        params, users_id, items_id, envs_id, alpha=1.0)
    jax.block_until_ready((inv_score, env_aware_score, env_outputs))

    ref_inv, ref_env, ref_out = _reference_forward(params, users_id, items_id, envs_id)
    assert inv_score.shape == (batch,)
    assert env_aware_score.shape == (batch,)
    assert env_outputs.shape == (batch, env_num)
    # bf16 staging/output: loosened tolerances (scores ~1e-3 magnitude, abs err ~1e-5;
    # log-softmax values ~1.4, bf16 quantization ~3e-3).
    assert jnp.allclose(inv_score, ref_inv, atol=1e-4, rtol=2e-2)
    assert jnp.allclose(env_aware_score, ref_env, atol=1e-4, rtol=2e-2)
    assert jnp.allclose(env_outputs, ref_out, atol=5e-3, rtol=2e-2)

    print("KERNEL_OK")
</pallas_src>

<mosaic_0001>
module attributes {stable_mosaic.version = 11 : i64} {
  func.func @_invpref_kernel(%arg0: i32, %arg1: memref<5x16x32xbf16, #tpu.memory_space<vmem>>, %arg2: memref<2x32x128xf32, #tpu.memory_space<vmem>>, %arg3: memref<1x128xf32, #tpu.memory_space<vmem>>, %arg4: memref<16x128xbf16, #tpu.memory_space<vmem>>) attributes {dimension_semantics = [#tpu.dimension_semantics<parallel>], iteration_bounds = array<i64: 1>, scalar_prefetch = 0 : i64, scratch_operands = 0 : i64, tpu.core_type = #tpu.core_type<tc>, window_params = [{transform_indices = @transform_0, window_bounds = array<i64: 5, 16, 32>}, {pipeline_mode = #tpu.pipeline_mode<synchronous>, transform_indices = @transform_1, window_bounds = array<i64: 2, 32, 128>}, {pipeline_mode = #tpu.pipeline_mode<synchronous>, transform_indices = @transform_2, window_bounds = array<i64: 1, 128>}, {transform_indices = @transform_3, window_bounds = array<i64: 16, 128>}]} {
    %c0 = arith.constant 0 : index
    %c0_0 = arith.constant 0 : index
    %c0_1 = arith.constant 0 : index
    %0 = vector.load %arg1[%c0, %c0_0, %c0_1] : memref<5x16x32xbf16, #tpu.memory_space<vmem>>, vector<1x16x32xbf16>
    %1 = vector.shape_cast %0 : vector<1x16x32xbf16> to vector<16x32xbf16>
    %2 = arith.extf %1 : vector<16x32xbf16> to vector<16x32xf32>
    %c1 = arith.constant 1 : index
    %c0_2 = arith.constant 0 : index
    %c0_3 = arith.constant 0 : index
    %3 = vector.load %arg1[%c1, %c0_2, %c0_3] : memref<5x16x32xbf16, #tpu.memory_space<vmem>>, vector<1x16x32xbf16>
    %4 = vector.shape_cast %3 : vector<1x16x32xbf16> to vector<16x32xbf16>
    %5 = arith.extf %4 : vector<16x32xbf16> to vector<16x32xf32>
    %6 = arith.mulf %2, %5 : vector<16x32xf32>
    %c2 = arith.constant 2 : index
    %c0_4 = arith.constant 0 : index
    %c0_5 = arith.constant 0 : index
    %7 = vector.load %arg1[%c2, %c0_4, %c0_5] : memref<5x16x32xbf16, #tpu.memory_space<vmem>>, vector<1x16x32xbf16>
    %8 = vector.shape_cast %7 : vector<1x16x32xbf16> to vector<16x32xbf16>
    %9 = arith.extf %8 : vector<16x32xbf16> to vector<16x32xf32>
    %c3 = arith.constant 3 : index
    %c0_6 = arith.constant 0 : index
    %c0_7 = arith.constant 0 : index
    %10 = vector.load %arg1[%c3, %c0_6, %c0_7] : memref<5x16x32xbf16, #tpu.memory_space<vmem>>, vector<1x16x32xbf16>
    %11 = vector.shape_cast %10 : vector<1x16x32xbf16> to vector<16x32xbf16>
    %12 = arith.extf %11 : vector<16x32xbf16> to vector<16x32xf32>
    %13 = arith.mulf %9, %12 : vector<16x32xf32>
    %c4 = arith.constant 4 : index
    %c0_8 = arith.constant 0 : index
    %c0_9 = arith.constant 0 : index
    %14 = vector.load %arg1[%c4, %c0_8, %c0_9] : memref<5x16x32xbf16, #tpu.memory_space<vmem>>, vector<1x16x32xbf16>
    %15 = vector.shape_cast %14 : vector<1x16x32xbf16> to vector<16x32xbf16>
    %16 = arith.extf %15 : vector<16x32xbf16> to vector<16x32xf32>
    %17 = arith.mulf %13, %16 : vector<16x32xf32>
    %c0_10 = arith.constant 0 : index
    %c0_11 = arith.constant 0 : index
    %c0_12 = arith.constant 0 : index
    %18 = vector.load %arg2[%c0_10, %c0_11, %c0_12] : memref<2x32x128xf32, #tpu.memory_space<vmem>>, vector<1x32x128xf32>
    %19 = vector.shape_cast %18 : vector<1x32x128xf32> to vector<32x128xf32>
    %cst = arith.constant dense<0.000000e+00> : vector<16x128xf32>
    %20 = tpu.matmul %6, %19, %cst {dimension_numbers = #tpu.dot_dimension_numbers<[1], [0], [0], [1], [0, 0, 1, 1], [], []>} : vector<16x32xf32>, vector<32x128xf32>, vector<16x128xf32> -> vector<16x128xf32>
    %c1_13 = arith.constant 1 : index
    %c0_14 = arith.constant 0 : index
    %c0_15 = arith.constant 0 : index
    %21 = vector.load %arg2[%c1_13, %c0_14, %c0_15] : memref<2x32x128xf32, #tpu.memory_space<vmem>>, vector<1x32x128xf32>
    %22 = vector.shape_cast %21 : vector<1x32x128xf32> to vector<32x128xf32>
    %cst_16 = arith.constant dense<0.000000e+00> : vector<16x128xf32>
    %23 = tpu.matmul %17, %22, %cst_16 {dimension_numbers = #tpu.dot_dimension_numbers<[1], [0], [0], [1], [0, 0, 1, 1], [], []>} : vector<16x32xf32>, vector<32x128xf32>, vector<16x128xf32> -> vector<16x128xf32>
    %24 = arith.addf %20, %23 : vector<16x128xf32>
    %c0_17 = arith.constant 0 : index
    %c0_18 = arith.constant 0 : index
    %25 = vector.load %arg3[%c0_17, %c0_18] : memref<1x128xf32, #tpu.memory_space<vmem>>, vector<1x128xf32>
    %26 = vector.broadcast %25 : vector<1x128xf32> to vector<16x128xf32>
    %27 = arith.addf %24, %26 : vector<16x128xf32>
    %28 = tpu.iota {dimensions = array<i32: 1>} : vector<16x128xi32>
    %c4_i32 = arith.constant 4 : i32
    %29 = vector.broadcast %c4_i32 : i32 to vector<16x128xi32>
    %30 = arith.cmpi slt, %28, %29 : vector<16x128xi32>
    %cst_19 = arith.constant -1.000000e+30 : f32
    %31 = vector.broadcast %cst_19 : f32 to vector<16x128xf32>
    %32 = arith.select %30, %27, %31 : vector<16x128xi1>, vector<16x128xf32>
    %cst_20 = arith.constant dense<0xFF800000> : vector<16xf32>
    %33 = vector.multi_reduction <maximumf>, %32, %cst_20 [1] : vector<16x128xf32> to vector<16xf32>
    %34 = vector.shape_cast %33 : vector<16xf32> to vector<16x1xf32>
    %35 = vector.broadcast %34 : vector<16x1xf32> to vector<16x128xf32>
    %36 = arith.subf %32, %35 : vector<16x128xf32>
    %37 = math.exp %36 : vector<16x128xf32>
    %cst_21 = arith.constant 0.000000e+00 : f32
    %38 = vector.broadcast %cst_21 : f32 to vector<16x128xf32>
    %39 = arith.select %30, %37, %38 : vector<16x128xi1>, vector<16x128xf32>
    %cst_22 = arith.constant dense<0.000000e+00> : vector<16xf32>
    %40 = vector.multi_reduction <add>, %39, %cst_22 [1] : vector<16x128xf32> to vector<16xf32>
    %41 = vector.shape_cast %40 : vector<16xf32> to vector<16x1xf32>
    %42 = math.log %41 : vector<16x1xf32>
    %43 = vector.broadcast %42 : vector<16x1xf32> to vector<16x128xf32>
    %44 = arith.subf %36, %43 : vector<16x128xf32>
    %45 = arith.select %30, %44, %27 : vector<16x128xi1>, vector<16x128xf32>
    %46 = arith.truncf %45 : vector<16x128xf32> to vector<16x128xbf16>
    %c0_23 = arith.constant 0 : index
    %c0_24 = arith.constant 0 : index
    %47 = vector.load %arg4[%c0_23, %c0_24] : memref<16x128xbf16, #tpu.memory_space<vmem>>, vector<16x128xbf16>
    tpu.vector_store %arg4[%c0_23, %c0_24], %46 {strides = array<i32>} : memref<16x128xbf16, #tpu.memory_space<vmem>>, vector<16x128xbf16>,
    return
  }
  func.func @transform_0(%arg0: i32) -> (i32, i32, i32) {
    %c0_i32 = arith.constant 0 : i32
    %c0_i32_0 = arith.constant 0 : i32
    %c0_i32_1 = arith.constant 0 : i32
    return %c0_i32, %arg0, %c0_i32_0 : i32, i32, i32
  }
  func.func @transform_1(%arg0: i32) -> (i32, i32, i32) {
    %c0_i32 = arith.constant 0 : i32
    %c0_i32_0 = arith.constant 0 : i32
    %c0_i32_1 = arith.constant 0 : i32
    %c0_i32_2 = arith.constant 0 : i32
    return %c0_i32, %c0_i32_0, %c0_i32_1 : i32, i32, i32
  }
  func.func @transform_2(%arg0: i32) -> (i32, i32) {
    %c0_i32 = arith.constant 0 : i32
    %c0_i32_0 = arith.constant 0 : i32
    %c0_i32_1 = arith.constant 0 : i32
    return %c0_i32, %c0_i32_0 : i32, i32
  }
  func.func @transform_3(%arg0: i32) -> (i32, i32) {
    %c0_i32 = arith.constant 0 : i32
    %c0_i32_0 = arith.constant 0 : i32
    return %arg0, %c0_i32 : i32, i32
  }
}

</mosaic_0001>

<bundles_post_ra>
// kernel: tpu_custom_call.1
= control target key start
LH: loop header
LB: loop body
LE: loop exit
PB: predicated region body
PF: predicated region fallthrough
CT: control target
= control target key end

     0   :  { %8 = vsyncpa [#allocation3], 0  ;;  %s511_s0 = inlined_call_operand.hbm [shape: bf16[5,16,32], index: 0, kind: input, shape index: {}]   ;;  %s512_s1 = inlined_call_operand.hbm [shape: f32[2,32,128], index: 1, kind: input, shape index: {}]   ;;  %s513_s2 = inlined_call_operand.vmem [shape: f32[1,128], index: 2, kind: input, shape index: {}]   ;;  %s514_s3 = inlined_call_operand.hbm [shape: bf16[16,128], index: 3, kind: output, shape index: {}]  }
   0x1   :  { %9 = vsyncpa [#allocation6], 0 }
   0x2   :  { %10 = vsyncpa [#allocation4], 0  ;;  %s460_s12 = smov [#allocation2]  }
   0x3   :  { %s16_s13 = sshll.u32 %s460_s12, 4  ;;  %s17_s13 = int_to_ptr.vmem [resolvable:$true] %s16_s13 }
   0x4   :  { %s402_s14 = scalar_lea.vmem %s17_s13, 640  ;;  %p407_p1 = scmp.lt.s32.totalorder %s17_s13, %s17_s13 }
   0x5   :  { %p403_p0 = scmp.ne.s32.totalorder %s17_s13, %s402_s14  ;;  %p408_p2 = scmp.lt.s32.totalorder %s402_s14, %s402_s14 }
   0x7   :  { %p409_p3 = por %p408_p2, %p407_p1 }
   0x9   :  { %p410_p4 = pnand %p409_p3, %p403_p0 }
   0xb   :  { %413 = shalt.err (!%p410_p4)
}
   0xc   :  { %s461_s15 = smov 64   ;;  %s462_s16 = smov 4  }
   0xd   :  { %22 = dma.hbm_to_vmem [thread:$0]  %s511_s0, 640, %s17_s13, [#allocation3], %s461_s15, %s461_s15, %s462_s16  }
   0xe   :  { %s463_s19 = smov [#allocation5]  }
   0xf   :  { %s28_s20 = sshll.u32 %s463_s19, 4  ;;  %s29_s20 = int_to_ptr.vmem [resolvable:$true] %s28_s20 }
  0x10   :  { %s422_s21 = scalar_lea.vmem %s29_s20, 1024  ;;  %p427_p6 = scmp.lt.s32.totalorder %s29_s20, %s29_s20 }
  0x11   :  { %p423_p5 = scmp.ne.s32.totalorder %s29_s20, %s422_s21  ;;  %p428_p7 = scmp.lt.s32.totalorder %s422_s21, %s422_s21 }
  0x13   :  { %p429_p8 = por %p428_p7, %p427_p6 }
  0x15   :  { %p430_p9 = pnand %p429_p8, %p423_p5 }
  0x17   :  { %433 = shalt.err (!%p430_p9)
}
  0x18   :  { %s464_s22 = smov 128   ;;  %s465_s23 = smov 8  }
  0x19   :  { %34 = dma.hbm_to_vmem [thread:$0]  %s512_s1, 1024, %s29_s20, [#allocation6], %s464_s22, %s464_s22, %s465_s23  }
  0x1a   :  { %454 = dma.done.wait [#allocation3], 640  }
  0x1b   :  { %455 = vsyncadd [#allocation3], 4294966656 }
  0x1c   :  { %456 = dma.done.wait [#allocation6], 1024  }
  0x1d   :  { %457 = vsyncadd [#allocation6], 4294966272  ;;  %v81_v0 = vld [vmem:[#allocation5 + $0x38] sm:$0xff]  ;;  %v80_v2 = vld [vmem:[#allocation5 + $0x30] sm:$0xff]  ;;  %vm82_vm0 = vcmask 261120   ;;  %v254_v29 = vlaneseq }
  0x1e   :  { %v76_v1 = vld [vmem:[#allocation5 + $0x18] sm:$0xff]  ;;  %357 = vmatprep.subr.mxu0 %v81_v0  ;;  %v75_v3 = vld [vmem:[#allocation5 + $0x10] sm:$0xff]  ;;  %v79_v4 = vld [vmem:[#allocation5 + $0x28] sm:$0xff] }
  0x1f   :  { %368 = vmatprep.subr.mxu1 %v76_v1  ;;  %358 = vmatpush3.msra.mxu0 %v81_v0  ;;  %v74_v5 = vld [vmem:[#allocation5 + $0x8] sm:$0xff]  ;;  %v333_v9 = vld [vmem:[#allocation2 + $0x18] sm:$0xff]   ;;  %v337_v10 = vld [vmem:[#allocation2 + $0x20] sm:$0xff]   ;;  %v255_v34 = vand.u32 127, %v254_v29 }
  0x20   :  { %369 = vmatpush3.msra.mxu1 %v76_v1  ;;  %v329_v6 = vld [vmem:[#allocation2 + $0x10] sm:$0xff]   ;;  %359 = vmatprep.subr.mxu0 %v80_v2  ;;  %v321_v11 = vld [vmem:[#allocation2] sm:$0xff]   ;;  %v78_v12 = vld [vmem:[#allocation5 + $0x20] sm:$0xff]  ;;  %v334_v14 = vunpack.c.l.bf16 %v333_v9  ;;  %v335_v15 = vunpack.c.h.bf16 %v333_v9  ;;  %v338_v16 = vunpack.c.l.bf16 %v337_v10  ;;  %v339_v17 = vunpack.c.h.bf16 %v337_v10 }
  0x21   :  { %370 = vmatprep.subr.mxu1 %v75_v3  ;;  %v330_v7 = vunpack.c.l.bf16 %v329_v6  ;;  %v331_v8 = vunpack.c.h.bf16 %v329_v6  ;;  %360 = vmatpush3.msra.mxu0 %v80_v2  ;;  %v73_v13 = vld [vmem:[#allocation5] sm:$0xff]  ;;  %v322_v19 = vunpack.c.l.bf16 %v321_v11  ;;  %v323_v20 = vunpack.c.h.bf16 %v321_v11  ;;  %v315_v37 = vld [vmem:[%s513_s2] ss:$0 sm:$0xff]  ;;  %s466_s2 = smov [#allocation7]  }
  0x22   :  { %371 = vmatpush3.msra.mxu1 %v75_v3  ;;  %v325_v18 = vld [vmem:[#allocation2 + $0x8] sm:$0xff]   ;;  %361 = vmatprep.subr.mxu0 %v79_v4  ;;  %vm256_vm1 = vcmp.lt.s32.totalorder %v255_v34, 4  ;;  %s298_s26 = sshll.u32 %s466_s2, 4  ;;  %s299_s26 = int_to_ptr.vmem [resolvable:$true] %s298_s26 }
  0x23   :  { %372 = vmatprep.subr.mxu1 %v74_v5  ;;  %v326_v21 = vunpack.c.l.bf16 %v325_v18  ;;  %v327_v22 = vunpack.c.h.bf16 %v325_v18  ;;  %362 = vmatpush3.msra.mxu0 %v79_v4  ;;  %v64_v23 = vmul.f32 %v334_v14, %v330_v7  ;;  %v65_v24 = vmul.f32 %v335_v15, %v331_v8  ;;  %s434_s27 = scalar_lea.vmem %s299_s26, 128  ;;  %p439_p11 = scmp.lt.s32.totalorder %s299_s26, %s299_s26 }
  0x24   :  { %373 = vmatpush3.msra.mxu1 %v74_v5  ;;  %363 = vmatprep.subr.mxu0 %v78_v12  ;;  %p435_p10 = scmp.ne.s32.totalorder %s299_s26, %s434_s27  ;;  %p440_p12 = scmp.lt.s32.totalorder %s434_s27, %s434_s27 }
  0x25   :  { %374 = vmatprep.subr.mxu1 %v73_v13  ;;  %v52_v25 = vmul.f32 %v326_v21, %v322_v19  ;;  %v53_v26 = vmul.f32 %v327_v22, %v323_v20  ;;  %364 = vmatpush3.msra.mxu0 %v78_v12  ;;  %v71_v27 = vmul.f32 %v338_v16, %v64_v23 }
  0x26   :  { %375 = vmatpush3.msra.mxu1 %v73_v13  ;;  %v72_v28 = vmul.f32 %v339_v17, %v65_v24  ;;  %p441_p13 = por %p440_p12, %p439_p11 }
  0x27   :  { %376 = vmatprep.mubr.msk.f32.mxu1 %vm82_vm0, %v52_v25  ;;  %365 = vmatprep.mubr.msk.f32.mxu0 %vm82_vm0, %v71_v27 }
  0x28   :  { %377 = vmatmul.mubr.msk.f32.vlgmr.msra.gmra.mxu1 %vm82_vm0, %v53_v26  ;;  %366 = vmatmul.mubr.msk.f32.vlgmr.msra.gmra.mxu0 %vm82_vm0, %v72_v28  ;;  %p442_p0 = pnand %p441_p13, %p435_p10 }
  0xe8   :  { %v378_v30 = vpop.f32.mrf.mxu1  ;;  %v367_v31 = vpop.f32.mrf.mxu0 }
  0xe9   :  { %v242_v35 = vadd.f32 %v378_v30, %v367_v31 }
  0xea   :  { %v236_v32 = vpop.f32.mrf.mxu1  ;;  %v155_v33 = vpop.f32.mrf.mxu0 }
  0xeb   :  { %v237_v36 = vadd.f32 %v236_v32, %v155_v33  ;;  %v253_v40 = vadd.f32 %v315_v37, %v242_v35 }
  0xed   :  { %v252_v38 = vadd.f32 %v315_v37, %v237_v36  ;;  %v258_v41 = vsel %vm256_vm1, %v253_v40, -1e+30 }
  0xef   :  { %v257_v39 = vsel %vm256_vm1, %v252_v38, -1e+30 }
  0xf0   :  { %259 = vmax.xlane.f32.xlu0 %v257_v39 }
  0xf4   :  { %261 = vmax.xlane.f32.xlu0 %v258_v41 }
 0x179   :  { %v260_v42 = vpop.xlane.xlu0 %259 }
 0x17a   :  { %v263_v43 = vsub.f32 %v257_v39, %v260_v42 }
 0x17c   :  { %v265_v44 = vmul.f32 1.442695, %v263_v43 }
 0x17d   :  { %v262_v45 = vpop.xlane.xlu0 %261 }
 0x17e   :  { %386 = vpow2.f32 %v265_v44  ;;  %v264_v46 = vsub.f32 %v258_v41, %v262_v45 }
 0x180   :  { %v267_v47 = vmul.f32 1.442695, %v264_v46 }
 0x182   :  { %388 = vpow2.f32 %v267_v47 }
 0x18b   :  { %v387_v48 = vpop.eup %386 }
 0x18c   :  { %v269_v49 = vsel %vm256_vm1, %v387_v48, 0.0 }
 0x18d   :  { %271 = vadd.xlane.f32.xlu1 %v269_v49 }
 0x18f   :  { %v389_v50 = vpop.eup %388 }
 0x190   :  { %v270_v51 = vsel %vm256_vm1, %v389_v50, 0.0 }
 0x191   :  { %273 = vadd.xlane.f32.xlu1 %v270_v51 }
 0x216   :  { %v272_v52 = vpop.xlane.xlu1 %271 }
 0x217   :  { %390 = vlog2.f32 %v272_v52 }
 0x21a   :  { %v274_v53 = vpop.xlane.xlu1 %273 }
 0x21b   :  { %392 = vlog2.f32 %v274_v53 }
 0x224   :  { %v391_v54 = vpop.eup %390 }
 0x225   :  { %v276_v55 = vmul.f32 0.6931472, %v391_v54 }
 0x227   :  { %v279_v57 = vsub.f32 %v263_v43, %v276_v55 }
 0x228   :  { %v393_v56 = vpop.eup %392 }
 0x229   :  { %v278_v58 = vmul.f32 0.6931472, %v393_v56  ;;  %v281_v60 = vsel %vm256_vm1, %v279_v57, %v252_v38 }
 0x22b   :  { %v280_v59 = vsub.f32 %v264_v46, %v278_v58 }
 0x22d   :  { %v282_v61 = vsel %vm256_vm1, %v280_v59, %v253_v40 }
 0x22e   :  { %v343_v62 = vpack.c.bf16 %v282_v61, %v281_v60 }
 0x230   :  { %344 = vst [vmem:[#allocation7] sm:$0xff] %v343_v62  }
 0x231   :  { %445 = shalt.err (!%p442_p0)
}
 0x232   :  { %304 = dma.vmem_to_hbm [thread:$0]  %s299_s26, 128, %s514_s3, [#allocation4], %s461_s15, %s461_s15, %s462_s16  }
 0x233   :  { %458 = dma.done.wait [#allocation4], 128  }
 0x234   :  { %459 = vsyncadd [#allocation4], 4294967168 }
 0x235   :  { %308 = vsyncpa [#allocation3], 1 }
 0x236   :  { %309 = vsyncpa [#allocation6], 1 }
 0x237   :  { %310 = vsyncpa [#allocation4], 1 }

</bundles_post_ra>
